<compile_context>
chip_gen: v7x
topology: tpu7x:2x2x1
jax: 0.10.0
libtpu: 0.0.40
codegen_flags: <defaults>
</compile_context>

<pallas_src>
import jax
import jax.numpy as jnp
from jax.experimental import pallas as pl
from jax.experimental.pallas import tpu as pltpu

EPS = 1e-5
LANE = 128


def _round_up(a, b):
    return (a + b - 1) // b * b


def _vmem_capacity_bytes():
    # v5e/v6e: 128 MiB per TensorCore; v7x: 64 MiB.  Query when possible,
    # fall back to the smallest (v7x) so the kernel stays portable.
    try:
        return int(pltpu.get_tpu_info().vmem_capacity_bytes)
    except Exception:
        return 64 * 1024 * 1024


def _pick_tn(dout_pad, max_tn=512):
    """Output-column tile: prefer 256-multiples (v6e/v7x MXU), 128 floor."""
    if dout_pad <= max_tn:
        return dout_pad
    for cand in (512, 256, 128):
        if cand <= max_tn and dout_pad % cand == 0:
            return cand
    return dout_pad


def _tile_vmem_bytes(tm, tn, d, x_bytes, w_bytes, out_bytes):
    return (2 * tm * d * x_bytes          # x row tiles (double-buffered)
            + 2 * d * tn * w_bytes        # weight column tiles
            + 2 * tm * tn * out_bytes     # output tiles
            + tm * d * 2                  # bf16 xn scratch (single buffer)
            + 8 * d * 4)                  # gamma / beta / linear bias


def prenorm_linear_kernel(x_ref, g_ref, b_ref, w_ref, wb_ref, o_ref, xn_ref):
    # x_ref : (tm, D)  row tile.  Its block index is constant across the j
    #                  axis, so Pallas fetches it once per row tile.
    # g_ref : (1, D)   LayerNorm gamma
    # b_ref : (1, D)   LayerNorm beta
    # w_ref : (D, tn)  bf16 linear-weight column tile (y = xn @ w)
    # wb_ref: (1, tn)  linear bias column tile
    # o_ref : (tm, tn) output tile
    # xn_ref: (tm, D)  bf16 VMEM scratch holding LayerNorm(x) for this row
    #                  tile; computed once at j == 0 and reused for every
    #                  weight-column tile (j axis is "arbitrary").
    @pl.when(pl.program_id(1) == 0)
    def _():
        x = x_ref[...].astype(jnp.float32)
        # torch.nn.LayerNorm: biased variance over the last dim, eps = 1e-5.
        mean = jnp.mean(x, axis=-1, keepdims=True)
        centered = x - mean
        var = jnp.mean(centered * centered, axis=-1, keepdims=True)
        xn = centered * jax.lax.rsqrt(var + EPS)
        xn = xn * g_ref[...].astype(jnp.float32) + b_ref[...].astype(jnp.float32)
        xn_ref[...] = xn.astype(xn_ref.dtype)

    # fn = Linear(dim, dim): bf16 operands into the MXU, f32 accumulation.
    y = jnp.dot(xn_ref[...], w_ref[...], preferred_element_type=jnp.float32)
    y = y + wb_ref[...].astype(jnp.float32)
    o_ref[...] = y.astype(o_ref.dtype)


def prenorm_linear(x, gamma, beta, w, wb, *, tm=None, tn=None,
                   compute_dtype=jnp.bfloat16, out_dtype=None):
    """PreNorm with fn = Linear: y = LayerNorm(x) @ w + wb.

    x: (B, N, D); gamma/beta: (D,); w: (D, Dout) laid out so y = xn @ w;
    wb: (Dout,).  Pass `w` already cast to `compute_dtype` (bf16) to avoid a
    per-call HBM cast.  `out_dtype` defaults to x.dtype; pass bf16 to cut
    output HBM traffic when the consumer accepts it.
    """
    B, N, D = x.shape
    Dout = w.shape[1]
    M = B * N

    out_dtype = x.dtype if out_dtype is None else jnp.dtype(out_dtype)
    x_bytes = jnp.dtype(x.dtype).itemsize
    out_bytes = jnp.dtype(out_dtype).itemsize
    w_bytes = jnp.dtype(compute_dtype).itemsize

    # --- lane-dense output: pad Dout (weight cols + bias) to a 128 multiple.
    Dout_pad = _round_up(Dout, LANE)
    if w.dtype != compute_dtype:
        # TODO(synk): hoist this cast to parameter init; per-call it costs
        # ~3*D*Dout bytes of extra HBM traffic.
        w = w.astype(compute_dtype)
    if Dout_pad != Dout:
        w = jnp.pad(w, ((0, 0), (0, Dout_pad - Dout)))
        wb = jnp.pad(wb, ((0, Dout_pad - Dout),))

    # --- tile selection ------------------------------------------------------
    if tn is None:
        tn = _pick_tn(Dout_pad)
    assert Dout_pad % tn == 0 and tn % LANE == 0

    if tm is None:
        tm = 1024 if D <= 1024 else 512   # HBM-bound regime: big row tiles
    tm = max(16, min(tm, _round_up(M, 16)))
    tm = _round_up(tm, 16)

    # Generation-aware clamp: keep the double-buffered tile footprint within
    # ~75% of physical VMEM (64 MiB on v7x, 128 MiB on v5e/v6e).
    vmem_cap = _vmem_capacity_bytes()
    budget = int(vmem_cap * 0.75)
    while (_tile_vmem_bytes(tm, tn, D, x_bytes, w_bytes, out_bytes) > budget
           and tn > LANE):
        new_tn = tn
        for cand in (512, 256, 128):
            if cand < tn and Dout_pad % cand == 0:
                new_tn = cand
                break
        if new_tn == tn:
            break
        tn = new_tn
    while (_tile_vmem_bytes(tm, tn, D, x_bytes, w_bytes, out_bytes) > budget
           and tm > 16):
        tm = max(16, _round_up(tm // 2, 16))

    need = _tile_vmem_bytes(tm, tn, D, x_bytes, w_bytes, out_bytes)
    vmem_limit = int(min(budget, max(32 * 1024 * 1024, need * 3 // 2)))

    x2 = x.reshape(M, D)          # view; no HBM copy
    g2 = gamma.reshape(1, D)
    b2 = beta.reshape(1, D)
    wb2 = wb.reshape(1, Dout_pad)

    cost = pl.CostEstimate(
        flops=2 * M * D * Dout_pad + 8 * M * D,
        transcendentals=M,
        bytes_accessed=(M * D * x_bytes
                        + D * Dout_pad * w_bytes
                        + M * Dout_pad * out_bytes),
    )

    out = pl.pallas_call(
        prenorm_linear_kernel,
        out_shape=jax.ShapeDtypeStruct((M, Dout_pad), out_dtype),
        grid_spec=pltpu.PrefetchScalarGridSpec(
            num_scalar_prefetch=0,
            # j (weight columns) is the fastest axis so the xn scratch filled
            # at j == 0 is valid for the whole row tile.
            grid=(pl.cdiv(M, tm), Dout_pad // tn),
            in_specs=[
                pl.BlockSpec((tm, D), lambda i, j: (i, 0)),    # x rows
                pl.BlockSpec((1, D), lambda i, j: (0, 0)),     # gamma
                pl.BlockSpec((1, D), lambda i, j: (0, 0)),     # beta
                pl.BlockSpec((D, tn), lambda i, j: (0, j)),    # weight cols
                pl.BlockSpec((1, tn), lambda i, j: (0, j)),    # linear bias
            ],
            out_specs=pl.BlockSpec((tm, tn), lambda i, j: (i, j)),
            scratch_shapes=[pltpu.VMEM((tm, D), compute_dtype)],  # cached xn
        ),
        compiler_params=pltpu.CompilerParams(
            dimension_semantics=("parallel", "arbitrary"),
            vmem_limit_bytes=vmem_limit,
        ),
        cost_estimate=cost,
    )(x2, g2, b2, w, wb2)

    if Dout_pad != Dout:
        out = out[:, :Dout]
    return out.reshape(B, N, Dout)


def prenorm_linear_reference(x, gamma, beta, w, wb, *, compute_dtype=None):
    """Pure-JAX reference. If compute_dtype is set, mirrors the bf16 MXU path."""
    x32 = x.astype(jnp.float32)
    mean = jnp.mean(x32, axis=-1, keepdims=True)
    var = jnp.mean((x32 - mean) ** 2, axis=-1, keepdims=True)
    xn = (x32 - mean) * jax.lax.rsqrt(var + EPS)
    xn = xn * gamma + beta
    if compute_dtype is not None:
        y = jnp.dot(xn.astype(compute_dtype), w.astype(compute_dtype),
                    preferred_element_type=jnp.float32)
    else:
        y = xn @ w
    return (y + wb).astype(x.dtype)


if __name__ == "__main__":
    key = jax.random.PRNGKey(0)
    # Small but lane-dense shapes (D is a multiple of 128, so output stores
    # are full-lane).  Note: at D=128 the kernel is HBM-bound; MXU-shape
    # considerations only matter for large model dims.
    B, N, D = 2, 8, 128

    k_x, k_g, k_b, k_w, k_wb = jax.random.split(key, 5)
    x = jax.random.normal(k_x, (B, N, D), dtype=jnp.float32)

    # Synthetic parameters (torch default LN init perturbed so the affine
    # path is exercised); fn = Linear(D, D) with weight stored transposed
    # (y = xn @ w).  The weight is cast to bf16 ONCE here ("init time") so
    # the per-call path never pays the cast.
    gamma = 1.0 + 0.1 * jax.random.normal(k_g, (D,), dtype=jnp.float32)
    beta = 0.1 * jax.random.normal(k_b, (D,), dtype=jnp.float32)
    w_f32 = jax.random.normal(k_w, (D, D), dtype=jnp.float32) * (1.0 / jnp.sqrt(D))
    wb = 0.1 * jax.random.normal(k_wb, (D,), dtype=jnp.float32)
    w_bf16 = w_f32.astype(jnp.bfloat16)

    out = prenorm_linear(x, gamma, beta, w_bf16, wb)
    out = jax.block_until_ready(out)
    assert out.shape == (B, N, D)

    # Tight check against a reference using the same bf16-operand / f32-acc
    # matmul path as the kernel.
    ref_bf16 = prenorm_linear_reference(x, gamma, beta, w_f32, wb,
                                        compute_dtype=jnp.bfloat16)
    assert jnp.allclose(out, ref_bf16, atol=1e-2, rtol=1e-2), \
        "mismatch vs bf16-path reference"

    # Loose check against the full-f32 math of the original torch module.
    ref_f32 = prenorm_linear_reference(x, gamma, beta, w_f32, wb)
    assert jnp.allclose(out, ref_f32, atol=6e-2, rtol=6e-2), \
        "mismatch vs f32 reference"

    print("KERNEL_OK")
</pallas_src>

<mosaic_0001>
module attributes {stable_mosaic.version = 11 : i64} {
  func.func @prenorm_linear_kernel(%arg0: i32, %arg1: i32, %arg2: memref<16x128xf32, #tpu.memory_space<vmem>>, %arg3: memref<1x128xf32, #tpu.memory_space<vmem>>, %arg4: memref<1x128xf32, #tpu.memory_space<vmem>>, %arg5: memref<128x128xbf16, #tpu.memory_space<vmem>>, %arg6: memref<1x128xf32, #tpu.memory_space<vmem>>, %arg7: memref<16x128xf32, #tpu.memory_space<vmem>>, %arg8: memref<16x128xbf16, #tpu.memory_space<vmem>>) attributes {dimension_semantics = [#tpu.dimension_semantics<parallel>, #tpu.dimension_semantics<arbitrary>], iteration_bounds = array<i64: 1, 1>, scalar_prefetch = 0 : i64, scratch_operands = 1 : i64, tpu.core_type = #tpu.core_type<tc>, window_params = [{transform_indices = @transform_0, window_bounds = array<i64: 16, 128>}, {pipeline_mode = #tpu.pipeline_mode<synchronous>, transform_indices = @transform_1, window_bounds = array<i64: 1, 128>}, {pipeline_mode = #tpu.pipeline_mode<synchronous>, transform_indices = @transform_2, window_bounds = array<i64: 1, 128>}, {transform_indices = @transform_3, window_bounds = array<i64: 128, 128>}, {transform_indices = @transform_4, window_bounds = array<i64: 1, 128>}, {transform_indices = @transform_5, window_bounds = array<i64: 16, 128>}]} {
    %c0_i32 = arith.constant 0 : i32
    %0 = arith.cmpi eq, %arg1, %c0_i32 : i32
    %1 = arith.extui %0 : i1 to i32
    %c0_i32_0 = arith.constant 0 : i32
    %2 = arith.cmpi ne, %1, %c0_i32_0 : i32
    scf.if %2 {
      %c0_8 = arith.constant 0 : index
      %c0_9 = arith.constant 0 : index
      %10 = vector.load %arg2[%c0_8, %c0_9] : memref<16x128xf32, #tpu.memory_space<vmem>>, vector<16x128xf32>
      %cst_10 = arith.constant dense<0.000000e+00> : vector<16xf32>
      %11 = vector.multi_reduction <add>, %10, %cst_10 [1] : vector<16x128xf32> to vector<16xf32>
      %12 = vector.shape_cast %11 : vector<16xf32> to vector<16x1xf32>
      %cst_11 = arith.constant 1.280000e+02 : f32
      %13 = vector.broadcast %cst_11 : f32 to vector<16x1xf32>
      %14 = arith.divf %12, %13 : vector<16x1xf32>
      %15 = vector.broadcast %14 : vector<16x1xf32> to vector<16x128xf32>
      %16 = arith.subf %10, %15 : vector<16x128xf32>
      %17 = arith.mulf %16, %16 : vector<16x128xf32>
      %cst_12 = arith.constant dense<0.000000e+00> : vector<16xf32>
      %18 = vector.multi_reduction <add>, %17, %cst_12 [1] : vector<16x128xf32> to vector<16xf32>
      %19 = vector.shape_cast %18 : vector<16xf32> to vector<16x1xf32>
      %cst_13 = arith.constant 1.280000e+02 : f32
      %20 = vector.broadcast %cst_13 : f32 to vector<16x1xf32>
      %21 = arith.divf %19, %20 : vector<16x1xf32>
      %cst_14 = arith.constant 9.99999974E-6 : f32
      %22 = vector.broadcast %cst_14 : f32 to vector<16x1xf32>
      %23 = arith.addf %21, %22 : vector<16x1xf32>
      %24 = math.rsqrt %23 : vector<16x1xf32>
      %25 = vector.broadcast %24 : vector<16x1xf32> to vector<16x128xf32>
      %26 = arith.mulf %16, %25 : vector<16x128xf32>
      %c0_15 = arith.constant 0 : index
      %c0_16 = arith.constant 0 : index
      %27 = vector.load %arg3[%c0_15, %c0_16] : memref<1x128xf32, #tpu.memory_space<vmem>>, vector<1x128xf32>
      %28 = vector.broadcast %27 : vector<1x128xf32> to vector<16x128xf32>
      %29 = arith.mulf %26, %28 : vector<16x128xf32>
      %c0_17 = arith.constant 0 : index
      %c0_18 = arith.constant 0 : index
      %30 = vector.load %arg4[%c0_17, %c0_18] : memref<1x128xf32, #tpu.memory_space<vmem>>, vector<1x128xf32>
      %31 = vector.broadcast %30 : vector<1x128xf32> to vector<16x128xf32>
      %32 = arith.addf %29, %31 : vector<16x128xf32>
      %33 = arith.truncf %32 : vector<16x128xf32> to vector<16x128xbf16>
      %c0_19 = arith.constant 0 : index
      %c0_20 = arith.constant 0 : index
      %34 = vector.load %arg8[%c0_19, %c0_20] : memref<16x128xbf16, #tpu.memory_space<vmem>>, vector<16x128xbf16>
      tpu.vector_store %arg8[%c0_19, %c0_20], %33 {strides = array<i32>} : memref<16x128xbf16, #tpu.memory_space<vmem>>, vector<16x128xbf16>,
    } else {
    }
    %c0 = arith.constant 0 : index
    %c0_1 = arith.constant 0 : index
    %3 = vector.load %arg8[%c0, %c0_1] : memref<16x128xbf16, #tpu.memory_space<vmem>>, vector<16x128xbf16>
    %c0_2 = arith.constant 0 : index
    %c0_3 = arith.constant 0 : index
    %4 = vector.load %arg5[%c0_2, %c0_3] : memref<128x128xbf16, #tpu.memory_space<vmem>>, vector<128x128xbf16>
    %cst = arith.constant dense<0.000000e+00> : vector<16x128xf32>
    %5 = tpu.matmul %3, %4, %cst {dimension_numbers = #tpu.dot_dimension_numbers<[1], [0], [0], [1], [0, 0, 1, 1], [], []>} : vector<16x128xbf16>, vector<128x128xbf16>, vector<16x128xf32> -> vector<16x128xf32>
    %c0_4 = arith.constant 0 : index
    %c0_5 = arith.constant 0 : index
    %6 = vector.load %arg6[%c0_4, %c0_5] : memref<1x128xf32, #tpu.memory_space<vmem>>, vector<1x128xf32>
    %7 = vector.broadcast %6 : vector<1x128xf32> to vector<16x128xf32>
    %8 = arith.addf %5, %7 : vector<16x128xf32>
    %c0_6 = arith.constant 0 : index
    %c0_7 = arith.constant 0 : index
    %9 = vector.load %arg7[%c0_6, %c0_7] : memref<16x128xf32, #tpu.memory_space<vmem>>, vector<16x128xf32>
    tpu.vector_store %arg7[%c0_6, %c0_7], %8 {strides = array<i32>} : memref<16x128xf32, #tpu.memory_space<vmem>>, vector<16x128xf32>,
    return
  }
  func.func @transform_0(%arg0: i32, %arg1: i32) -> (i32, i32) {
    %c0_i32 = arith.constant 0 : i32
    %c0_i32_0 = arith.constant 0 : i32
    return %arg0, %c0_i32 : i32, i32
  }
  func.func @transform_1(%arg0: i32, %arg1: i32) -> (i32, i32) {
    %c0_i32 = arith.constant 0 : i32
    %c0_i32_0 = arith.constant 0 : i32
    %c0_i32_1 = arith.constant 0 : i32
    return %c0_i32, %c0_i32_0 : i32, i32
  }
  func.func @transform_2(%arg0: i32, %arg1: i32) -> (i32, i32) {
    %c0_i32 = arith.constant 0 : i32
    %c0_i32_0 = arith.constant 0 : i32
    %c0_i32_1 = arith.constant 0 : i32
    return %c0_i32, %c0_i32_0 : i32, i32
  }
  func.func @transform_3(%arg0: i32, %arg1: i32) -> (i32, i32) {
    %c0_i32 = arith.constant 0 : i32
    %c0_i32_0 = arith.constant 0 : i32
    return %c0_i32, %arg1 : i32, i32
  }
  func.func @transform_4(%arg0: i32, %arg1: i32) -> (i32, i32) {
    %c0_i32 = arith.constant 0 : i32
    %c0_i32_0 = arith.constant 0 : i32
    return %c0_i32, %arg1 : i32, i32
  }
  func.func @transform_5(%arg0: i32, %arg1: i32) -> (i32, i32) {
    %c0_i32 = arith.constant 0 : i32
    return %arg0, %arg1 : i32, i32
  }
}

</mosaic_0001>

<bundles_post_ra>
// kernel: tpu_custom_call.1
= control target key start
LH: loop header
LB: loop body
LE: loop exit
PB: predicated region body
PF: predicated region fallthrough
CT: control target
= control target key end

     0   :  { %10 = vsyncpa [#allocation4], 0  ;;  %s455_s0 = inlined_call_operand.hbm [shape: f32[16,128], index: 0, kind: input, shape index: {}]   ;;  %s456_s1 = inlined_call_operand.vmem [shape: f32[1,128], index: 1, kind: input, shape index: {}]   ;;  %s457_s2 = inlined_call_operand.vmem [shape: f32[1,128], index: 2, kind: input, shape index: {}]   ;;  %s458_s3 = inlined_call_operand.hbm [shape: bf16[128,128], index: 3, kind: input, shape index: {}]   ;;  %s459_s4 = inlined_call_operand.vmem [shape: f32[1,128], index: 4, kind: input, shape index: {}]   ;;  %s460_s5 = inlined_call_operand.hbm [shape: f32[16,128], index: 5, kind: output, shape index: {}]  }
   0x1   :  { %11 = vsyncpa [#allocation7], 0 }
   0x2   :  { %12 = vsyncpa [#allocation5], 0  ;;  %s365_s18 = smov [#allocation3]   ;;  %s293_s22 = scalar_lea.hbm %s455_s0, 256 }
   0x3   :  { %s18_s19 = sshll.u32 %s365_s18, 4  ;;  %p294_p0 = scmp.ne.s32.totalorder %s455_s0, %s293_s22  ;;  %s19_s19 = int_to_ptr.vmem [resolvable:$true] %s18_s19 }
   0x4   :  { %p297_p1 = scmp.lt.u32.totalorder %s293_s22, %s455_s0 }
   0x6   :  { %p299_p2 = pnand %p297_p1, %p294_p0 }
   0x8   :  { %302 = shalt.err (!%p299_p2)
}
   0x9   :  { %s303_s27 = scalar_lea.vmem %s19_s19, 256  ;;  %p308_p4 = scmp.lt.s32.totalorder %s19_s19, %s19_s19 }
   0xa   :  { %p304_p3 = scmp.ne.s32.totalorder %s19_s19, %s303_s27  ;;  %p309_p5 = scmp.lt.s32.totalorder %s303_s27, %s303_s27 }
   0xc   :  { %p310_p6 = por %p309_p5, %p308_p4 }
   0xe   :  { %p311_p7 = pnand %p310_p6, %p304_p3 }
  0x10   :  { %314 = shalt.err (!%p311_p7)
}
  0x11   :  { %s366_s28 = smov 128   ;;  %s367_s29 = smov 8  }
  0x12   :  { %24 = dma.hbm_to_vmem [thread:$0]  %s455_s0, 256, %s19_s19, [#allocation4], %s366_s28, %s366_s28, %s367_s29  }
  0x13   :  { %s368_s7 = smov [#allocation6]   ;;  %s315_s11 = scalar_lea.hbm %s458_s3, 1024 }
  0x14   :  { %s34_s8 = sshll.u32 %s368_s7, 4  ;;  %p316_p8 = scmp.ne.s32.totalorder %s458_s3, %s315_s11  ;;  %s35_s8 = int_to_ptr.vmem [resolvable:$true] %s34_s8 }
  0x15   :  { %p319_p9 = scmp.lt.u32.totalorder %s315_s11, %s458_s3 }
  0x17   :  { %p321_p10 = pnand %p319_p9, %p316_p8 }
  0x19   :  { %324 = shalt.err (!%p321_p10)
}
  0x1a   :  { %s325_s16 = scalar_lea.vmem %s35_s8, 1024  ;;  %p330_p12 = scmp.lt.s32.totalorder %s35_s8, %s35_s8 }
  0x1b   :  { %p326_p11 = scmp.ne.s32.totalorder %s35_s8, %s325_s16  ;;  %p331_p13 = scmp.lt.s32.totalorder %s325_s16, %s325_s16 }
  0x1d   :  { %p332_p0 = por %p331_p13, %p330_p12 }
  0x1f   :  { %p333_p1 = pnand %p332_p0, %p326_p11 }
  0x21   :  { %336 = shalt.err (!%p333_p1)
}
  0x22   :  { %s369_s0 = smov 64   ;;  %s370_s17 = smov 4  }
  0x23   :  { %40 = dma.hbm_to_vmem [thread:$0]  %s458_s3, 1024, %s35_s8, [#allocation7], %s369_s0, %s369_s0, %s370_s17  }
  0x24   :  { %359 = dma.done.wait [#allocation4], 256  }
  0x25   :  { %360 = vsyncadd [#allocation4], 4294967040 }
  0x26   :  { %361 = dma.done.wait [#allocation7], 1024  }
  0x27   :  { %362 = vsyncadd [#allocation7], 4294966272  ;;  %v54_v0 = vld [vmem:[#allocation3] sm:$0xff]  ;;  %v55_v1 = vld [vmem:[#allocation3 + $0x8] sm:$0xff]  ;;  %v371_v3 = vmov 0.0   ;;  %vm372_vm0 = vmmov 0  }
  0x28   :  { %56 = vadd.xlane.f32.xlu0 %v54_v0  ;;  %v281_v2 = vld [vmem:[#allocation6] sm:$0xff]   ;;  %252 = vmatprep.subr.bf16.mxu0 %v371_v3  ;;  %v282_v12 = vld [vmem:[#allocation6 + $0x8] sm:$0xff]   ;;  %v283_v13 = vld [vmem:[#allocation6 + $0x10] sm:$0xff]   ;;  %s373_s25 = smov [#allocation8]  }
  0x29   :  { %253 = vmatpush3.bf16.msra.mxu0 %v281_v2  ;;  %v284_v14 = vld [vmem:[#allocation6 + $0x18] sm:$0xff]   ;;  %v285_v15 = vld [vmem:[#allocation6 + $0x20] sm:$0xff]   ;;  %268 = vmatprep.mubr.msk.bf16.mxu0 %vm372_vm0, %v371_v3  ;;  %v286_v16 = vld [vmem:[#allocation6 + $0x28] sm:$0xff]   ;;  %s219_s26 = sshll.u32 %s373_s25, 4  ;;  %s220_s26 = int_to_ptr.vmem [resolvable:$true] %s219_s26 }
  0x2a   :  { %254 = vmatprep.subr.bf16.mxu0 %v371_v3  ;;  %v287_v17 = vld [vmem:[#allocation6 + $0x30] sm:$0xff]   ;;  %v288_v18 = vld [vmem:[#allocation6 + $0x38] sm:$0xff]   ;;  %p342_p3 = scmp.lt.s32.totalorder %s220_s26, %s220_s26 }
  0x2b   :  { %v232_v27 = vld [vmem:[%s456_s1] ss:$0 sm:$0xff]  ;;  %s337_s1 = scalar_lea.vmem %s220_s26, 256 }
  0x2c   :  { %58 = vadd.xlane.f32.xlu0 %v55_v1  ;;  %v233_v31 = vld [vmem:[%s457_s2] ss:$0 sm:$0xff]  ;;  %p338_p2 = scmp.ne.s32.totalorder %s220_s26, %s337_s1  ;;  %p343_p4 = scmp.lt.s32.totalorder %s337_s1, %s337_s1 }
  0x2d   :  { %255 = vmatpush3.bf16.msra.mxu0 %v282_v12  ;;  %v234_v36 = vld [vmem:[%s459_s4] ss:$0 sm:$0xff] }
  0x2e   :  { %256 = vmatprep.subr.bf16.mxu0 %v371_v3  ;;  %p344_p5 = por %p343_p4, %p342_p3 }
  0x30   :  { %p345_p6 = pnand %p344_p5, %p338_p2 }
  0x31   :  { %257 = vmatpush3.bf16.msra.mxu0 %v283_v13 }
  0x32   :  { %258 = vmatprep.subr.bf16.mxu0 %v371_v3 }
  0x35   :  { %259 = vmatpush3.bf16.msra.mxu0 %v284_v14 }
  0x36   :  { %260 = vmatprep.subr.bf16.mxu0 %v371_v3 }
  0x39   :  { %261 = vmatpush3.bf16.msra.mxu0 %v285_v15 }
  0x3a   :  { %262 = vmatprep.subr.bf16.mxu0 %v371_v3 }
  0x3d   :  { %263 = vmatpush3.bf16.msra.mxu0 %v286_v16 }
  0x3e   :  { %264 = vmatprep.subr.bf16.mxu0 %v371_v3 }
  0x41   :  { %265 = vmatpush3.bf16.msra.mxu0 %v287_v17 }
  0x42   :  { %266 = vmatprep.subr.bf16.mxu0 %v371_v3 }
  0x45   :  { %267 = vmatpush3.bf16.msra.mxu0 %v288_v18 }
  0xb5   :  { %v57_v4 = vpop.xlane.xlu0 %56 }
  0xb6   :  { %v61_v5 = vmul.f32 0.0078125, %v57_v4 }
  0xb8   :  { %v63_v6 = vsub.f32 %v54_v0, %v61_v5 }
  0xb9   :  { %v59_v7 = vpop.xlane.xlu0 %58 }
  0xba   :  { %v62_v8 = vmul.f32 0.0078125, %v59_v7  ;;  %v65_v9 = vmul.f32 %v63_v6, %v63_v6 }
  0xbc   :  { %v64_v10 = vsub.f32 %v55_v1, %v62_v8  ;;  %67 = vadd.xlane.f32.xlu1 %v65_v9 }
  0xbe   :  { %v66_v11 = vmul.f32 %v64_v10, %v64_v10 }
  0xc0   :  { %69 = vadd.xlane.f32.xlu1 %v66_v11 }
 0x149   :  { %v68_v19 = vpop.xlane.xlu1 %67 }
 0x14a   :  { %v71_v20 = vmul.f32 0.0078125, %v68_v19 }
 0x14c   :  { %v73_v21 = vadd.f32 1e-05, %v71_v20 }
 0x14d   :  { %v70_v22 = vpop.xlane.xlu1 %69 }
 0x14e   :  { %289 = vrsqrt.f32 %v73_v21  ;;  %v72_v23 = vmul.f32 0.0078125, %v70_v22 }
 0x150   :  { %v74_v24 = vadd.f32 1e-05, %v72_v23 }
 0x152   :  { %291 = vrsqrt.f32 %v74_v24 }
 0x158   :  { %v290_v25 = vpop.eup %289 }
 0x159   :  { %v77_v26 = vmul.f32 %v290_v25, %v63_v6 }
 0x15b   :  { %v86_v30 = vmul.f32 %v232_v27, %v77_v26 }
 0x15c   :  { %v292_v28 = vpop.eup %291 }
 0x15d   :  { %v78_v29 = vmul.f32 %v292_v28, %v64_v10  ;;  %v95_v33 = vadd.f32 %v233_v31, %v86_v30 }
 0x15f   :  { %v87_v32 = vmul.f32 %v232_v27, %v78_v29 }
 0x161   :  { %v96_v34 = vadd.f32 %v233_v31, %v87_v32 }
 0x163   :  { %v97_v35 = vpack.c.bf16 %v96_v34, %v95_v33 }
 0x165   :  { %269 = vmatmul.mubr.bf16.vlgmr.msra.gmra.mrb[0].mxu0 %v97_v35 }
 0x238   :  { %v205_v37 = vpop.f32.mrb[0].mxu0 }
 0x239   :  { %v206_v38 = vadd.f32 %v234_v36, %v205_v37  ;;  %v270_v39 = vpop.f32.mrb[1].mxu0 }
 0x23a   :  { %v208_v40 = vpop.f32.mrb[2].mxu0 }
 0x23b   :  { %212 = vst [vmem:[#allocation8] sm:$0xff] %v206_v38  ;;  %v209_v41 = vadd.f32 %v234_v36, %v208_v40  ;;  %v271_v42 = vpop.f32.mrb[3].mxu0 }
 0x23d   :  { %213 = vst [vmem:[#allocation8 + $0x8] sm:$0xff] %v209_v41 }
 0x23e   :  { %348 = shalt.err (!%p345_p6)
}
 0x23f   :  { %s349_s27 = scalar_lea.hbm %s460_s5, 256 }
 0x240   :  { %p350_p7 = scmp.ne.s32.totalorder %s460_s5, %s349_s27  ;;  %p353_p8 = scmp.lt.u32.totalorder %s349_s27, %s460_s5 }
 0x242   :  { %p355_p9 = pnand %p353_p8, %p350_p7 }
 0x244   :  { %358 = shalt.err (!%p355_p9)
}
 0x245   :  { %225 = dma.vmem_to_hbm [thread:$0]  %s220_s26, 256, %s460_s5, [#allocation5], %s366_s28, %s366_s28, %s367_s29  }
 0x246   :  { %363 = dma.done.wait [#allocation5], 256  }
 0x247   :  { %364 = vsyncadd [#allocation5], 4294967040 }
 0x248   :  { %229 = vsyncpa [#allocation4], 1 }
 0x249   :  { %230 = vsyncpa [#allocation7], 1 }
 0x24a   :  { %231 = vsyncpa [#allocation5], 1 }

</bundles_post_ra>
